<compile_context>
chip_gen: v7x
topology: tpu7x:2x2x1
jax: 0.10.0
libtpu: 0.0.40
codegen_flags: <defaults>
</compile_context>

<pallas_src>
import functools

import jax
import jax.numpy as jnp
from jax.experimental import pallas as pl
from jax.experimental.pallas import tpu as pltpu

D_MODEL = 768
NUM_LABELS = 4
LANE = 128        # lane-dense output width (>= NUM_LABELS)
_NEG_BIG = -1e30  # padded-logit bias, keeps downstream softmax/argmax correct


def _round_up(x, m):
    return ((x + m - 1) // m) * m


def head_kernel(x_ref, w_ref, b_ref, o_ref):
    """logits_tile = x_tile @ W_eff + b_eff  (single bf16 MXU matmul, f32 acc)."""
    acc = jnp.dot(x_ref[...], w_ref[...], preferred_element_type=jnp.float32)
    o_ref[...] = (acc + b_ref[...].astype(jnp.float32)).astype(o_ref.dtype)


@functools.partial(jax.jit, static_argnames=("block_b", "padded"))
def combined_model_forward(hidden_states, w_eff, b_eff, *, block_b=4096,
                           padded=False):
    """Pallas implementation of CombinedModel.forward (no labels -> logits).

    hidden_states: (B, S, D) or (B, D) -- last hidden state of base_model, or
                   (preferred) the already-contiguous CLS slab.  bf16 or f32.
    w_eff: (D, LANE)  folded W1 @ W2, lane-padded, bf16 (prepared once)
    b_eff: (1, LANE)  folded b1 @ W2 + b2, lane-padded with -1e30, bf16
    padded: if True return the lane-dense (B, 128) logits slab (no extra
            slice pass); padded lanes hold ~-1e30 so argmax/softmax ignore
            them.  If False return exact (B, NUM_LABELS) module semantics.
    """
    if hidden_states.ndim == 3:
        # TODO(synk): ideally the upstream encoder emits the CLS rows as a
        # contiguous (B, D) slab; this slice is kept only for API parity.
        cls = hidden_states[:, 0, :]
    else:
        cls = hidden_states

    B, D = cls.shape
    Lp = w_eff.shape[1]

    # Batch tile: as large as VMEM comfortably allows, but aim for >= 2 grid
    # steps when B is large so the "parallel" axis shards across both v7x
    # TensorCores.  Multiple of 16 keeps bf16/f32 sublane tiling happy; a
    # block equal to the full batch is always legal when B is small.
    target = _round_up(pl.cdiv(B, 2), 16)
    TB = min(block_b, target)
    if TB >= B:
        TB = B
    grid = (pl.cdiv(B, TB),)

    bytes_accessed = (
        cls.size * cls.dtype.itemsize
        + w_eff.size * w_eff.dtype.itemsize
        + b_eff.size * b_eff.dtype.itemsize
        + B * Lp * 4
    )
    cost = pl.CostEstimate(
        flops=2 * B * D * Lp,
        transcendentals=0,
        bytes_accessed=bytes_accessed,
    )

    out = pl.pallas_call(
        head_kernel,
        out_shape=jax.ShapeDtypeStruct((B, Lp), jnp.float32),
        grid=grid,
        in_specs=[
            # Contiguous CLS slab, tiled over the batch.
            pl.BlockSpec((TB, D), lambda i: (i, 0)),
            # Folded weight / bias: constant index_map -> stay VMEM-resident.
            pl.BlockSpec((D, Lp), lambda i: (0, 0)),
            pl.BlockSpec((1, Lp), lambda i: (0, 0)),
        ],
        out_specs=pl.BlockSpec((TB, Lp), lambda i: (i, 0)),
        compiler_params=pltpu.CompilerParams(
            dimension_semantics=("parallel",),
            # Large tiles overflow v5e's 16 MiB scoped default; 32 MiB is
            # safely within physical VMEM on v5e/v6e/v7x.
            vmem_limit_bytes=32 * 1024 * 1024,
        ),
        cost_estimate=cost,
    )(cls, w_eff, b_eff)

    if padded:
        return out
    return out[:, :NUM_LABELS]


def init_params(key):
    """Deterministic PyTorch-nn.Linear-style init (uniform +-1/sqrt(fan_in)).

    Weights stored transposed relative to torch, i.e. (in, out), so the math
    is x @ W.
    """
    k1, k2, k3, k4 = jax.random.split(key, 4)
    bound = 1.0 / jnp.sqrt(jnp.float32(D_MODEL))
    w1 = jax.random.uniform(k1, (D_MODEL, D_MODEL), jnp.float32, -bound, bound)
    b1 = jax.random.uniform(k2, (D_MODEL,), jnp.float32, -bound, bound)
    w2 = jax.random.uniform(k3, (D_MODEL, NUM_LABELS), jnp.float32, -bound, bound)
    b2 = jax.random.uniform(k4, (NUM_LABELS,), jnp.float32, -bound, bound)
    return w1, b1, w2, b2


def fold_head_params(w1, b1, w2, b2, lane=LANE, param_dtype=jnp.bfloat16):
    """One-time (off the per-call path) fold of the two bias-linear layers.

    (x @ W1 + b1) @ W2 + b2  ==  x @ (W1 @ W2) + (b1 @ W2 + b2)
    Valid because the PyTorch module has no activation/dropout between
    feed_forward and classifier (inference).  Lane-pads to 128 outputs so the
    kernel's store stays lane-dense; padded bias lanes are -1e30 so the padded
    logits slab is safe for downstream softmax/argmax.  Cast to bf16 once here
    (fold itself computed in f32).
    """
    L = w2.shape[1]
    Lp = max(lane, _round_up(L, lane))
    w_fold = (w1 @ w2).astype(jnp.float32)            # (D, L)
    b_fold = (b1 @ w2 + b2).astype(jnp.float32)       # (L,)
    w_eff = jnp.zeros((w1.shape[0], Lp), jnp.float32).at[:, :L].set(w_fold)
    b_eff = jnp.full((1, Lp), _NEG_BIG, jnp.float32).at[0, :L].set(b_fold)
    return w_eff.astype(param_dtype), b_eff.astype(param_dtype)


def reference_forward(hidden_states, w1, b1, w2, b2):
    x = hidden_states[:, 0, :].astype(jnp.float32)
    h = x @ w1 + b1
    return h @ w2 + b2


if __name__ == "__main__":
    key = jax.random.PRNGKey(0)
    k_params, k_x1, k_x2 = jax.random.split(key, 3)

    w1, b1, w2, b2 = init_params(k_params)
    # Folded + cast to bf16 once at parameter-load time, NOT per forward call.
    w_eff, b_eff = fold_head_params(w1, b1, w2, b2)
    w_eff, b_eff = jax.block_until_ready((w_eff, b_eff))

    # --- small demo shapes consistent with the module (B=2, S=8, D=768) ---
    B1, S = 2, 8
    hs1 = jax.random.normal(k_x1, (B1, S, D_MODEL), jnp.bfloat16)
    logits1 = jax.block_until_ready(combined_model_forward(hs1, w_eff, b_eff))
    ref1 = reference_forward(hs1, w1, b1, w2, b2)
    assert logits1.shape == (B1, NUM_LABELS), logits1.shape
    assert jnp.allclose(logits1, ref1, atol=5e-2, rtol=5e-2), (
        float(jnp.max(jnp.abs(logits1 - ref1)))
    )

    # --- multi-block grid (>=2 steps, partial last block) + padded output ---
    B2 = 300
    hs2 = jax.random.normal(k_x2, (B2, S, D_MODEL), jnp.bfloat16)
    padded2 = jax.block_until_ready(
        combined_model_forward(hs2, w_eff, b_eff, padded=True)
    )
    ref2 = reference_forward(hs2, w1, b1, w2, b2)
    assert padded2.shape == (B2, LANE), padded2.shape
    assert jnp.allclose(padded2[:, :NUM_LABELS], ref2, atol=5e-2, rtol=5e-2), (
        float(jnp.max(jnp.abs(padded2[:, :NUM_LABELS] - ref2)))
    )
    # Padded lanes carry the -1e30 bias -> safe for downstream softmax/argmax.
    assert bool(jnp.all(padded2[:, NUM_LABELS:] < -1e20))

    print("KERNEL_OK")
</pallas_src>

<mosaic_0001>
module attributes {stable_mosaic.version = 11 : i64} {
  func.func @head_kernel(%arg0: i32, %arg1: memref<2x768xbf16, #tpu.memory_space<vmem>>, %arg2: memref<768x128xbf16, #tpu.memory_space<vmem>>, %arg3: memref<1x128xbf16, #tpu.memory_space<vmem>>, %arg4: memref<2x128xf32, #tpu.memory_space<vmem>>) attributes {dimension_semantics = [#tpu.dimension_semantics<parallel>], iteration_bounds = array<i64: 1>, scalar_prefetch = 0 : i64, scratch_operands = 0 : i64, tpu.core_type = #tpu.core_type<tc>, window_params = [{transform_indices = @transform_0, window_bounds = array<i64: 2, 768>}, {pipeline_mode = #tpu.pipeline_mode<synchronous>, transform_indices = @transform_1, window_bounds = array<i64: 768, 128>}, {pipeline_mode = #tpu.pipeline_mode<synchronous>, transform_indices = @transform_2, window_bounds = array<i64: 1, 128>}, {transform_indices = @transform_3, window_bounds = array<i64: 2, 128>}]} {
    %c0 = arith.constant 0 : index
    %c0_0 = arith.constant 0 : index
    %0 = vector.load %arg1[%c0, %c0_0] : memref<2x768xbf16, #tpu.memory_space<vmem>>, vector<2x768xbf16>
    %c0_1 = arith.constant 0 : index
    %c0_2 = arith.constant 0 : index
    %1 = vector.load %arg2[%c0_1, %c0_2] : memref<768x128xbf16, #tpu.memory_space<vmem>>, vector<768x128xbf16>
    %cst = arith.constant dense<0.000000e+00> : vector<2x128xf32>
    %2 = tpu.matmul %0, %1, %cst {dimension_numbers = #tpu.dot_dimension_numbers<[1], [0], [0], [1], [0, 0, 1, 1], [], []>} : vector<2x768xbf16>, vector<768x128xbf16>, vector<2x128xf32> -> vector<2x128xf32>
    %c0_3 = arith.constant 0 : index
    %c0_4 = arith.constant 0 : index
    %3 = vector.load %arg3[%c0_3, %c0_4] : memref<1x128xbf16, #tpu.memory_space<vmem>>, vector<1x128xbf16>
    %4 = arith.extf %3 : vector<1x128xbf16> to vector<1x128xf32>
    %5 = vector.broadcast %4 : vector<1x128xf32> to vector<2x128xf32>
    %6 = arith.addf %2, %5 : vector<2x128xf32>
    %c0_5 = arith.constant 0 : index
    %c0_6 = arith.constant 0 : index
    %7 = vector.load %arg4[%c0_5, %c0_6] : memref<2x128xf32, #tpu.memory_space<vmem>>, vector<2x128xf32>
    tpu.vector_store %arg4[%c0_5, %c0_6], %6 {strides = array<i32>} : memref<2x128xf32, #tpu.memory_space<vmem>>, vector<2x128xf32>,
    return
  }
  func.func @transform_0(%arg0: i32) -> (i32, i32) {
    %c0_i32 = arith.constant 0 : i32
    %c0_i32_0 = arith.constant 0 : i32
    return %arg0, %c0_i32 : i32, i32
  }
  func.func @transform_1(%arg0: i32) -> (i32, i32) {
    %c0_i32 = arith.constant 0 : i32
    %c0_i32_0 = arith.constant 0 : i32
    %c0_i32_1 = arith.constant 0 : i32
    return %c0_i32, %c0_i32_0 : i32, i32
  }
  func.func @transform_2(%arg0: i32) -> (i32, i32) {
    %c0_i32 = arith.constant 0 : i32
    %c0_i32_0 = arith.constant 0 : i32
    %c0_i32_1 = arith.constant 0 : i32
    return %c0_i32, %c0_i32_0 : i32, i32
  }
  func.func @transform_3(%arg0: i32) -> (i32, i32) {
    %c0_i32 = arith.constant 0 : i32
    %c0_i32_0 = arith.constant 0 : i32
    return %arg0, %c0_i32 : i32, i32
  }
}

</mosaic_0001>

<bundles_post_ra>
// kernel: combined_model_forward.1
= control target key start
LH: loop header
LB: loop body
LE: loop exit
PB: predicated region body
PF: predicated region fallthrough
CT: control target
= control target key end

     0   :  { %8 = vsyncpa [#allocation3], 0  ;;  %s886_s0 = inlined_call_operand.vmem [shape: bf16[2,768], index: 0, kind: input, shape index: {}]   ;;  %s887_s1 = inlined_call_operand.hbm [shape: bf16[768,128], index: 1, kind: input, shape index: {}]   ;;  %s888_s2 = inlined_call_operand.vmem [shape: bf16[1,128], index: 2, kind: input, shape index: {}]   ;;  %s889_s3 = inlined_call_operand.hbm [shape: f32[2,128], index: 3, kind: output, shape index: {}]  }
   0x1   :  { %9 = vsyncpa [#allocation4], 0  ;;  %s827_s12 = smov [#allocation2]   ;;  %s779_s16 = scalar_lea.hbm %s887_s1, 6144 }
   0x2   :  { %s17_s13 = sshll.u32 %s827_s12, 4  ;;  %p780_p0 = scmp.ne.s32.totalorder %s887_s1, %s779_s16  ;;  %s18_s13 = int_to_ptr.vmem [resolvable:$true] %s17_s13 }
   0x3   :  { %p783_p1 = scmp.lt.u32.totalorder %s779_s16, %s887_s1 }
   0x5   :  { %p785_p2 = pnand %p783_p1, %p780_p0 }
   0x7   :  { %788 = shalt.err (!%p785_p2)
}
   0x8   :  { %s789_s21 = scalar_lea.vmem %s18_s13, 6144  ;;  %p794_p4 = scmp.lt.s32.totalorder %s18_s13, %s18_s13 }
   0x9   :  { %p790_p3 = scmp.ne.s32.totalorder %s18_s13, %s789_s21  ;;  %p795_p5 = scmp.lt.s32.totalorder %s789_s21, %s789_s21 }
   0xb   :  { %p796_p6 = por %p795_p5, %p794_p4 }
   0xd   :  { %p797_p7 = pnand %p796_p6, %p790_p3 }
   0xf   :  { %800 = shalt.err (!%p797_p7)
}
  0x10   :  { %s828_s22 = smov 64   ;;  %s829_s23 = smov 4  }
  0x11   :  { %23 = dma.hbm_to_vmem [thread:$0]  %s887_s1, 6144, %s18_s13, [#allocation3], %s828_s22, %s828_s22, %s829_s23  }
  0x12   :  { %823 = dma.done.wait [#allocation3], 6144  }
  0x13   :  { %824 = vsyncadd [#allocation3], 4294961152  ;;  %v730_v0 = vld [vmem:[#allocation2 + $0x40] sm:$0xff]   ;;  %v734_v4 = vld [vmem:[#allocation2 + $0x48] sm:$0xff]   ;;  %v129_v21 = vlaneseq  ;;  %v830_v22 = vmov 1966171168  }
  0x14   :  { %v731_v1 = vld [vmem:[#allocation2] sm:$0xff]   ;;  %659 = vmatprep.subr.bf16.mxu0 %v730_v0  ;;  %v735_v5 = vld [vmem:[#allocation2 + $0x8] sm:$0xff]   ;;  %v738_v8 = vld [vmem:[#allocation2 + $0x50] sm:$0xff]   ;;  %v136_v23 = vunpack.c.l.s4 %v830_v22  ;;  %s831_s28 = smov [#allocation5]  }
  0x15   :  { %v732_v2 = vld [vmem:[#allocation2 + $0xc0] sm:$0xff]   ;;  %660 = vmatpush3.bf16.msra.mxu0 %v731_v1  ;;  %v736_v6 = vld [vmem:[#allocation2 + $0xc8] sm:$0xff]   ;;  %v739_v9 = vld [vmem:[#allocation2 + $0x10] sm:$0xff]   ;;  %v864_v28 = vshrl.u32 %v129_v21, 7 }
  0x16   :  { %v733_v3 = vld [vmem:[#allocation2 + $0x80] sm:$0xff]   ;;  %681 = vmatprep.subr.bf16.mxu1 %v732_v2  ;;  %661 = vmatprep.subr.bf16.mxu0 %v734_v4  ;;  %v737_v7 = vld [vmem:[#allocation2 + $0x88] sm:$0xff]   ;;  %v740_v10 = vld [vmem:[#allocation2 + $0xd0] sm:$0xff]   ;;  %v137_v29 = vunpack.c.0.s8 %v136_v23 }
  0x17   :  { %682 = vmatpush3.bf16.msra.mxu1 %v733_v3  ;;  %v741_v11 = vld [vmem:[#allocation2 + $0x90] sm:$0xff]   ;;  %v742_v12 = vld [vmem:[#allocation2 + $0x58] sm:$0xff]   ;;  %v746_v16 = vld [vmem:[#allocation2 + $0x60] sm:$0xff]   ;;  %v131_v4 = vsub.s32 0, %v864_v28 }
  0x18   :  { %683 = vmatprep.subr.bf16.mxu1 %v736_v6  ;;  %v743_v13 = vld [vmem:[#allocation2 + $0x18] sm:$0xff]   ;;  %v747_v17 = vld [vmem:[#allocation2 + $0x20] sm:$0xff]   ;;  %v750_v20 = vld [vmem:[#allocation2 + $0x68] sm:$0xff]   ;;  %v140_v34 = vsub.s32 %v137_v29, %v864_v28 }
  0x19   :  { %662 = vmatpush3.bf16.msra.mxu0 %v735_v5  ;;  %v744_v14 = vld [vmem:[#allocation2 + $0xd8] sm:$0xff]   ;;  %v748_v18 = vld [vmem:[#allocation2 + $0xe0] sm:$0xff]   ;;  %v751_v24 = vld [vmem:[#allocation2 + $0x28] sm:$0xff]  }
  0x1a   :  { %663 = vmatprep.subr.bf16.mxu0 %v738_v8  ;;  %v745_v15 = vld [vmem:[#allocation2 + $0x98] sm:$0xff]   ;;  %v749_v19 = vld [vmem:[#allocation2 + $0xa0] sm:$0xff]   ;;  %v752_v25 = vld [vmem:[#allocation2 + $0xe8] sm:$0xff]  }
  0x1b   :  { %684 = vmatpush3.bf16.msra.mxu1 %v737_v7  ;;  %v753_v26 = vld [vmem:[#allocation2 + $0xa8] sm:$0xff]   ;;  %v754_v27 = vld [vmem:[#allocation2 + $0x70] sm:$0xff]   ;;  %v758_v33 = vld [vmem:[#allocation2 + $0x78] sm:$0xff]  }
  0x1c   :  { %685 = vmatprep.subr.bf16.mxu1 %v740_v10  ;;  %v755_v30 = vld [vmem:[#allocation2 + $0x30] sm:$0xff]   ;;  %v759_v35 = vld [vmem:[#allocation2 + $0x38] sm:$0xff]   ;;  %v30_v37 = vld [vmem:[%s886_s0] sm:$0x3f] }
  0x1d   :  { %664 = vmatpush3.bf16.msra.mxu0 %v739_v9  ;;  %v756_v31 = vld [vmem:[#allocation2 + $0xf0] sm:$0xff]   ;;  %v760_v36 = vld [vmem:[#allocation2 + $0xf8] sm:$0xff]   ;;  %v134_v38 = vcombine.high %v30_v37, %v30_v37  ;;  %v141_v39 = vrot.slane %v30_v37, %v140_v34  ;;  %v763_v41 = vld [vmem:[#allocation2 + $0x140] sm:$0xff]  }
  0x1e   :  { %665 = vmatprep.subr.bf16.mxu0 %v742_v12  ;;  %v757_v32 = vld [vmem:[#allocation2 + $0xb0] sm:$0xff]   ;;  %v762_v40 = vld [vmem:[#allocation2 + $0xb8] sm:$0xff]   ;;  %v764_v46 = vld [vmem:[#allocation2 + $0x100] sm:$0xff]  }
  0x1f   :  { %686 = vmatpush3.bf16.msra.mxu1 %v741_v11  ;;  %v149_v42 = vcombine.high %v141_v39, %v141_v39  ;;  %v157_v43 = vrot.slane %v141_v39, %v140_v34  ;;  %v148_v44 = vrot.slane %v134_v38, %v140_v34  ;;  %v765_v49 = vld [vmem:[#allocation2 + $0x148] sm:$0xff]   ;;  %v767_v53 = vld [vmem:[#allocation2 + $0x150] sm:$0xff]   ;;  %v769_v55 = vld [vmem:[#allocation2 + $0x158] sm:$0xff]  }
  0x20   :  { %687 = vmatprep.subr.bf16.mxu1 %v744_v14  ;;  %v766_v52 = vld [vmem:[#allocation2 + $0x108] sm:$0xff]   ;;  %v768_v54 = vld [vmem:[#allocation2 + $0x110] sm:$0xff]   ;;  %v770_v56 = vld [vmem:[#allocation2 + $0x118] sm:$0xff]  }
  0x21   :  { %666 = vmatpush3.bf16.msra.mxu0 %v743_v13  ;;  %v171_v45 = vrot.slane %v149_v42, %v140_v34  ;;  %v150_v47 = vcombine.high %v148_v44, %v148_v44  ;;  %v179_v48 = vcombine.high %v157_v43, %v157_v43  ;;  %v771_v57 = vld [vmem:[#allocation2 + $0x160] sm:$0xff]   ;;  %v773_v59 = vld [vmem:[#allocation2 + $0x168] sm:$0xff]   ;;  %v775_v61 = vld [vmem:[#allocation2 + $0x170] sm:$0xff]   ;;  %v164_v1 = vrot.slane %v148_v44, %v140_v34 }
  0x22   :  { %667 = vmatprep.subr.bf16.mxu0 %v746_v16  ;;  %v772_v58 = vld [vmem:[#allocation2 + $0x120] sm:$0xff]   ;;  %v774_v60 = vld [vmem:[#allocation2 + $0x128] sm:$0xff]   ;;  %v776_v62 = vld [vmem:[#allocation2 + $0x130] sm:$0xff]  }
  0x23   :  { %688 = vmatpush3.bf16.msra.mxu1 %v745_v15  ;;  %507 = vmatprep.mubr.bf16.mxu0 %v171_v45  ;;  %v180_v50 = vcombine.high %v171_v45, %v171_v45  ;;  %v178_v51 = vrot.slane %v150_v47, %v140_v34  ;;  %v777_v63 = vld [vmem:[#allocation2 + $0x178] sm:$0xff]   ;;  %v127_v2 = vld [vmem:[%s888_s2] sm:$0x1]  ;;  %s602_s2 = sshll.u32 %s831_s28, 4  ;;  %s603_s2 = int_to_ptr.vmem [resolvable:$true] %s602_s2 }
  0x24   :  { %689 = vmatprep.subr.bf16.mxu1 %v748_v18  ;;  %v778_v0 = vld [vmem:[#allocation2 + $0x138] sm:$0xff]   ;;  %v128_v3 = vunpack.c.l.bf16 %v127_v2  ;;  %s801_s29 = scalar_lea.vmem %s603_s2, 32  ;;  %p806_p9 = scmp.lt.s32.totalorder %s603_s2, %s603_s2 }
  0x25   :  { %668 = vmatpush3.bf16.msra.mxu0 %v747_v17  ;;  %547 = vmatprep.mubr.bf16.mxu1 %v180_v50  ;;  %p802_p8 = scmp.ne.s32.totalorder %s603_s2, %s801_s29  ;;  %p807_p10 = scmp.lt.s32.totalorder %s801_s29, %s801_s29 }
  0x26   :  { %669 = vmatprep.subr.bf16.mxu0 %v750_v20  ;;  %v132_v6 = vrot.slane %v128_v3, %v131_v4 }
  0x27   :  { %690 = vmatpush3.bf16.msra.mxu1 %v749_v19  ;;  %p808_p11 = por %p807_p10, %p806_p9 }
  0x28   :  { %691 = vmatprep.subr.bf16.mxu1 %v752_v25 }
  0x29   :  { %670 = vmatpush3.bf16.msra.mxu0 %v751_v24  ;;  %p809_p12 = pnand %p808_p11, %p802_p8 }
  0x2a   :  { %671 = vmatprep.subr.bf16.mxu0 %v754_v27 }
  0x2b   :  { %692 = vmatpush3.bf16.msra.mxu1 %v753_v26 }
  0x2c   :  { %693 = vmatprep.subr.bf16.mxu1 %v756_v31 }
  0x2d   :  { %672 = vmatpush3.bf16.msra.mxu0 %v755_v30 }
  0x2e   :  { %673 = vmatprep.subr.bf16.mxu0 %v758_v33 }
  0x2f   :  { %694 = vmatpush3.bf16.msra.mxu1 %v757_v32 }
  0x30   :  { %695 = vmatprep.subr.bf16.mxu1 %v760_v36 }
  0x31   :  { %674 = vmatpush3.bf16.msra.mxu0 %v759_v35 }
  0x32   :  { %703 = vmatprep.subr.bf16.mxu0 %v763_v41 }
  0x33   :  { %696 = vmatpush3.bf16.msra.mxu1 %v762_v40 }
  0x34   :  { %508 = vmatmul.mubr.bf16.vlgmr.msra.gmra.mrb[0].mxu0 %v157_v43 }
  0x35   :  { %704 = vmatpush3.bf16.msra.mxu0 %v764_v46  ;;  %587 = vmatprep.mubr.bf16.mxu0 %v178_v51 }
  0x36   :  { %548 = vmatmul.mubr.bf16.vlgmr.msra.gmra.mrb[0].mxu1 %v179_v48  ;;  %705 = vmatprep.subr.bf16.mxu0 %v765_v49 }
  0x39   :  { %706 = vmatpush3.bf16.msra.mxu0 %v766_v52 }
  0x3a   :  { %707 = vmatprep.subr.bf16.mxu0 %v767_v53 }
  0x3d   :  { %708 = vmatpush3.bf16.msra.mxu0 %v768_v54 }
  0x3e   :  { %709 = vmatprep.subr.bf16.mxu0 %v769_v55 }
  0x41   :  { %710 = vmatpush3.bf16.msra.mxu0 %v770_v56 }
  0x42   :  { %711 = vmatprep.subr.bf16.mxu0 %v771_v57 }
  0x45   :  { %712 = vmatpush3.bf16.msra.mxu0 %v772_v58 }
  0x46   :  { %713 = vmatprep.subr.bf16.mxu0 %v773_v59 }
  0x49   :  { %714 = vmatpush3.bf16.msra.mxu0 %v774_v60 }
  0x4a   :  { %715 = vmatprep.subr.bf16.mxu0 %v775_v61 }
  0x4d   :  { %716 = vmatpush3.bf16.msra.mxu0 %v776_v62 }
  0x4e   :  { %717 = vmatprep.subr.bf16.mxu0 %v777_v63 }
  0x51   :  { %718 = vmatpush3.bf16.msra.mxu0 %v778_v0 }
  0x54   :  { %588 = vmatmul.mubr.bf16.vlgmr.msra.gmra.mrb[4].mxu0 %v164_v1 }
 0x107   :  { %v675_v5 = vpop.f32.mrb[0].mxu0 }
 0x108   :  { %v676_v7 = vpop.f32.mrb[1].mxu0 }
 0x109   :  { %v677_v8 = vadd.f32 %v676_v7, %v675_v5  ;;  %v678_v9 = vpop.f32.mrb[2].mxu0  ;;  %v697_v10 = vpop.f32.mrb[0].mxu1 }
 0x10a   :  { %v679_v11 = vpop.f32.mrb[3].mxu0  ;;  %v698_v12 = vpop.f32.mrb[1].mxu1 }
 0x10b   :  { %v510_v13 = vadd.f32 %v677_v8, %v132_v6  ;;  %v699_v14 = vadd.f32 %v698_v12, %v697_v10  ;;  %v700_v15 = vpop.f32.mrb[2].mxu1 }
 0x10c   :  { %v701_v16 = vpop.f32.mrb[3].mxu1 }
 0x10d   :  { %v550_v17 = vadd.f32 %v699_v14, %v510_v13 }
 0x127   :  { %v719_v18 = vpop.f32.mrb[4].mxu0 }
 0x128   :  { %v720_v19 = vpop.f32.mrb[5].mxu0 }
 0x129   :  { %v721_v20 = vadd.f32 %v720_v19, %v719_v18  ;;  %v722_v21 = vpop.f32.mrb[6].mxu0 }
 0x12a   :  { %v723_v22 = vpop.f32.mrb[7].mxu0 }
 0x12b   :  { %v590_v23 = vadd.f32 %v721_v20, %v550_v17 }
 0x12d   :  { %595 = vst [vmem:[#allocation5] sm:$0x3] %v590_v23 }
 0x12e   :  { %812 = shalt.err (!%p809_p12)
}
 0x12f   :  { %s813_s5 = scalar_lea.hbm %s889_s3, 32 }
 0x130   :  { %p814_p13 = scmp.ne.s32.totalorder %s889_s3, %s813_s5  ;;  %p817_p0 = scmp.lt.u32.totalorder %s813_s5, %s889_s3 }
 0x132   :  { %p819_p1 = pnand %p817_p0, %p814_p13 }
 0x134   :  { %822 = shalt.err (!%p819_p1)
}
 0x135   :  { %605 = dma.vmem_to_hbm [thread:$0]  %s603_s2, 32, %s889_s3, [#allocation4]  }
 0x136   :  { %825 = dma.done.wait [#allocation4], 32  }
 0x137   :  { %826 = vsyncadd [#allocation4], 4294967264 }
 0x138   :  { %609 = vsyncpa [#allocation3], 1 }
 0x139   :  { %610 = vsyncpa [#allocation4], 1 }

</bundles_post_ra>
